<compile_context>
chip_gen: v5e
topology: v5e:2x2
jax: 0.10.0
libtpu: 0.0.40
codegen_flags: <defaults>
</compile_context>

<pallas_src>
import jax
import jax.numpy as jnp
from jax.experimental import pallas as pl
from jax.experimental.pallas import tpu as pltpu


def _sfdp_kernel(scalars_ref, q_ref, k_ref, v_ref, o_ref):
    """scalars_ref (SMEM, (2,) f32) = [1/p1, dropout_keep_scale]."""
    inv_p1 = scalars_ref[0]
    drop_scale = scalars_ref[1]

    q = q_ref[...].astype(jnp.float32)
    k = k_ref[...].astype(jnp.float32)

    # (1, p1) @ (p1, 1) -> (1, 1): a single lane-reduce, no MXU / transpose needed.
    s = jnp.sum(q * k, axis=-1, keepdims=True) * inv_p1            # (1, 1)

    # softmax over a size-1 axis: exp(s - max(s)) / sum == 1 for finite s,
    # NaN for NaN/Inf scores (matches the full reference's behavior).
    attn = jnp.exp(s - s)                                           # (1, 1)

    scale = attn * drop_scale                                       # (1, 1)
    o_ref[...] = (v_ref[...].astype(jnp.float32) * scale).astype(o_ref.dtype)


def model_forward(x1, query, key, value, *, p1, dropout_p=0.0, rng_key=None):
    """Mirrors Model.forward. x1 is accepted but unused (as in the torch module)."""
    del x1  # unused by the torch forward

    P1 = query.shape[1]
    DV = value.shape[1]
    inv_p1 = jnp.float32(1.0 / float(p1))

    dropout_p = float(dropout_p)
    if dropout_p <= 0.0:
        drop_scale = jnp.float32(1.0)                      # identity dropout
    elif dropout_p >= 1.0:
        drop_scale = jnp.float32(0.0)                      # torch: p=1.0 -> zeros
    else:
        if rng_key is None:
            rng_key = jax.random.PRNGKey(0)
        # One Bernoulli draw on the (1,1) attention matrix, folded into a scalar
        # keep/(1-p) factor. Computed as a plain fused XLA op (portable, cheap).
        u = jax.random.uniform(rng_key, (), dtype=jnp.float32)
        drop_scale = jnp.where(
            u >= jnp.float32(dropout_p),
            jnp.float32(1.0 / (1.0 - dropout_p)),
            jnp.float32(0.0),
        )

    scalars = jnp.stack([inv_p1, drop_scale]).astype(jnp.float32)   # (2,) f32 -> SMEM

    cost = pl.CostEstimate(
        flops=2 * P1 + 2 * DV + 4,
        transcendentals=1,
        bytes_accessed=4 * (2 * P1 + 2 * DV + 2),
    )

    return pl.pallas_call(
        _sfdp_kernel,
        out_shape=jax.ShapeDtypeStruct((1, DV), value.dtype),
        in_specs=[
            pl.BlockSpec(memory_space=pltpu.SMEM),   # [1/p1, dropout scale]
            pl.BlockSpec(memory_space=pltpu.VMEM),   # query (1, p1)
            pl.BlockSpec(memory_space=pltpu.VMEM),   # key   (1, p1)
            pl.BlockSpec(memory_space=pltpu.VMEM),   # value (1, DV)
        ],
        out_specs=pl.BlockSpec(memory_space=pltpu.VMEM),
        cost_estimate=cost,
    )(scalars, query, key, value)


def reference_forward(query, key, value, p1):
    """Straightforward JAX reference of the full (un-simplified) torch forward."""
    s = (query @ key.T) / float(p1)
    attn = jax.nn.softmax(s, axis=-1)
    return attn @ value


if __name__ == "__main__":
    # Small shapes consistent with the module's parametrization Model(p1).
    P1 = 8      # feature dim of query/key
    DV = 16     # feature dim of the (undefined-in-torch) value parameter

    key0 = jax.random.PRNGKey(0)
    kq, kk, kv, kx, kd = jax.random.split(key0, 5)

    # Deterministic "torch.rand"-style params in [0, 1)
    query = jax.random.uniform(kq, (1, P1), dtype=jnp.float32)
    key_p = jax.random.uniform(kk, (1, P1), dtype=jnp.float32)
    value = jax.random.uniform(kv, (1, DV), dtype=jnp.float32)

    # Forward input (unused by the module's forward, kept for signature parity)
    x1 = jax.random.normal(kx, (2, 4, 16, 16), dtype=jnp.float32)

    # Deterministic path (dropout_p == 0): must match the full reference.
    out = jax.block_until_ready(
        model_forward(x1, query, key_p, value, p1=P1, dropout_p=0.0)
    )
    ref = reference_forward(query, key_p, value, P1)
    assert out.shape == (1, DV), out.shape
    assert jnp.allclose(out, ref, atol=1e-6, rtol=1e-6), (out, ref)

    # Dropout path (dropout_p > 0): output is exactly 0 or value / (1 - p).
    p_drop = 0.5
    out_d = jax.block_until_ready(
        model_forward(x1, query, key_p, value, p1=P1, dropout_p=p_drop, rng_key=kd)
    )
    ok_zero = bool(jnp.allclose(out_d, 0.0, atol=1e-6))
    ok_keep = bool(jnp.allclose(out_d, value / (1.0 - p_drop), atol=1e-5, rtol=1e-5))
    assert out_d.shape == (1, DV) and (ok_zero or ok_keep), out_d

    # p == 1.0 edge case (torch returns zeros; previous version raised ZeroDivisionError).
    out_z = jax.block_until_ready(
        model_forward(x1, query, key_p, value, p1=P1, dropout_p=1.0)
    )
    assert bool(jnp.allclose(out_z, 0.0, atol=1e-6)), out_z

    print("KERNEL_OK")
</pallas_src>

<mosaic_0001>
module attributes {stable_mosaic.version = 11 : i64} {
  func.func @_sfdp_kernel(%arg0: memref<2xf32, #tpu.memory_space<smem>>, %arg1: memref<1x8xf32, #tpu.memory_space<vmem>>, %arg2: memref<1x8xf32, #tpu.memory_space<vmem>>, %arg3: memref<1x16xf32, #tpu.memory_space<vmem>>, %arg4: memref<1x16xf32, #tpu.memory_space<vmem>>) attributes {dimension_semantics = [], scalar_prefetch = 0 : i64, scratch_operands = 0 : i64, tpu.core_type = #tpu.core_type<tc>} {
    %c0 = arith.constant 0 : index
    %0 = memref.load %arg0[%c0] : memref<2xf32, #tpu.memory_space<smem>>
    %c1 = arith.constant 1 : index
    %1 = memref.load %arg0[%c1] : memref<2xf32, #tpu.memory_space<smem>>
    %c0_0 = arith.constant 0 : index
    %c0_1 = arith.constant 0 : index
    %2 = vector.load %arg1[%c0_0, %c0_1] : memref<1x8xf32, #tpu.memory_space<vmem>>, vector<1x8xf32>
    %c0_2 = arith.constant 0 : index
    %c0_3 = arith.constant 0 : index
    %3 = vector.load %arg2[%c0_2, %c0_3] : memref<1x8xf32, #tpu.memory_space<vmem>>, vector<1x8xf32>
    %4 = arith.mulf %2, %3 : vector<1x8xf32>
    %cst = arith.constant dense<0.000000e+00> : vector<1xf32>
    %5 = vector.multi_reduction <add>, %4, %cst [1] : vector<1x8xf32> to vector<1xf32>
    %6 = vector.shape_cast %5 : vector<1xf32> to vector<1x1xf32>
    %7 = vector.broadcast %0 : f32 to vector<1x1xf32>
    %8 = arith.mulf %6, %7 : vector<1x1xf32>
    %9 = arith.subf %8, %8 : vector<1x1xf32>
    %10 = math.exp %9 : vector<1x1xf32>
    %11 = vector.broadcast %1 : f32 to vector<1x1xf32>
    %12 = arith.mulf %10, %11 : vector<1x1xf32>
    %c0_4 = arith.constant 0 : index
    %c0_5 = arith.constant 0 : index
    %13 = vector.load %arg3[%c0_4, %c0_5] : memref<1x16xf32, #tpu.memory_space<vmem>>, vector<1x16xf32>
    %14 = vector.broadcast %12 : vector<1x1xf32> to vector<1x16xf32>
    %15 = arith.mulf %13, %14 : vector<1x16xf32>
    %c0_6 = arith.constant 0 : index
    %c0_7 = arith.constant 0 : index
    %16 = vector.load %arg4[%c0_6, %c0_7] : memref<1x16xf32, #tpu.memory_space<vmem>>, vector<1x16xf32>
    tpu.vector_store %arg4[%c0_6, %c0_7], %15 {strides = array<i32>} : memref<1x16xf32, #tpu.memory_space<vmem>>, vector<1x16xf32>,
    return
  }
}

</mosaic_0001>

<bundles_post_ra>
// kernel: tpu_custom_call.1
= control target key start
LH: loop header
LB: loop body
LE: loop exit
PB: predicated region body
PF: predicated region fallthrough
CT: control target
= control target key end

     0   :  { %9 = vsyncpa [#allocation5], 0  ;;  %s198_s0 = inlined_call_operand.hbm [shape: f32[2], index: 0, kind: input, shape index: {}]   ;;  %s199_s1 = inlined_call_operand.hbm [shape: f32[1,8], index: 1, kind: input, shape index: {}]   ;;  %s200_s2 = inlined_call_operand.vmem [shape: f32[1,8], index: 2, kind: input, shape index: {}]   ;;  %s201_s3 = inlined_call_operand.vmem [shape: f32[1,16], index: 3, kind: input, shape index: {}]   ;;  %s202_s4 = inlined_call_operand.hbm [shape: f32[1,16], index: 4, kind: output, shape index: {}]  }
   0x1   :  { %10 = vsyncpa [#allocation3], 0 }
   0x2   :  { %11 = vsyncpa [#allocation4], 0  ;;  %s17_s17 = sshll.u32 %s198_s0, 4  ;;  %s26_s20 = sshll.u32 %s199_s1, 4  ;;  %s18_s17 = int_to_ptr.hbm [resolvable:$true] %s17_s17  ;;  %s27_s20 = int_to_ptr.hbm [resolvable:$true] %s26_s20 }
   0x3   :  { %s155_s21 = smov [#allocation2]   ;;  %s156_s22 = smov [#allocation6]  }
   0x4   :  { %20 = dma.hbm_to_smem %s18_s17, 16, %s155_s21, [#allocation5]  }
   0x5   :  { %s28_s23 = sshll.u32 %s156_s22, 4  ;;  %s29_s23 = int_to_ptr.vmem [resolvable:$true] %s28_s23 }
   0x6   :  { %31 = dma.hbm_to_vmem [thread:$0]  %s27_s20, 16, %s29_s23, [#allocation3]  }
   0x7   :  { %149 = dma.done.wait [#allocation5], 16  }
   0x8   :  { %150 = vsyncadd [#allocation5], 4294967280 }
   0x9   :  { %151 = dma.done.wait [#allocation3], 16  }
   0xa   :  { %152 = vsyncadd [#allocation3], 4294967280 }
   0xb   :  { %44 = sfence }
   0xc   :  { %v47_v0 = vld [vmem:[#allocation6] sm:$0x1]  ;;  %vm50_vm0 = vcmask 57344   ;;  %s45_s1 = sld [smem:[#allocation2]]  ;;  %s157_s28 = smov [#allocation7]   ;;  %vm63_vm1 = vcmask 122880  }
   0xd   :  { %v48_v1 = vld [vmem:[%s200_s2] sm:$0x1]  ;;  %s83_s25 = sld [smem:[#allocation2 + $0x1]]  ;;  %s70_s2 = sshll.u32 %s157_s28, 4  ;;  %s71_s2 = int_to_ptr.vmem [resolvable:$true] %s70_s2 }
   0xe   :  { %v49_v2 = vmul.f32 %v48_v1, %v47_v0  ;;  %v61_v11 = vld [vmem:[%s201_s3] sm:$0x1]  ;;  %s72_s5 = sshll.u32 %s202_s4, 4  ;;  %s73_s5 = int_to_ptr.hbm [resolvable:$true] %s72_s5 }
  0x10   :  { %v51_v3 = vsel %vm50_vm0, %v49_v2, 0.0 }
  0x11   :  { %52 = vadd.xlane.f32.xlu0 %v51_v3 }
  0x12   :  { %v54_v4 = vstv %s45_s1 }
  0x13   :  { %v59_v9 = vstv %s83_s25 }
  0x84   :  { %v53_v5 = vpop.xlane.xlu0 %52 }
  0x85   :  { %v55_v6 = vmul.f32 %v54_v4, %v53_v5 }
  0x87   :  { %v56_v7 = vsub.f32 %v55_v6, %v55_v6 }
  0x89   :  { %v57_v8 = vmul.f32 1.442695, %v56_v7 }
  0x8b   :  { %87 = vpow2.f32 %v57_v8 }
  0x91   :  { %v88_v10 = vpop.eup %87 }
  0x92   :  { %v60_v12 = vmul.f32 %v88_v10, %v59_v9 }
  0x94   :  { %v62_v13 = vmul.f32 %v61_v11, %v60_v12 }
  0x96   :  { %64 = vst.msk [vmem:[#allocation7] sm:$0x1] %vm63_vm1, %v62_v13 }
  0x97   :  { %75 = dma.vmem_to_hbm [thread:$0]  %s71_s2, 16, %s73_s5, [#allocation4]  }
  0x98   :  { %153 = dma.done.wait [#allocation4], 16  }
  0x99   :  { %154 = vsyncadd [#allocation4], 4294967280 }
  0x9a   :  { %80 = vsyncpa [#allocation3], 1 }
  0x9b   :  { %81 = vsyncpa [#allocation4], 1 }
  0x9c   :  { %82 = vsyncpa [#allocation5], 1 }

</bundles_post_ra>
